<compile_context>
chip_gen: v7x
topology: tpu7x:2x2x1
jax: 0.10.0
libtpu: 0.0.40
codegen_flags: <defaults>
</compile_context>

<pallas_src>
import functools

import jax
import jax.numpy as jnp
from jax.experimental import pallas as pl
from jax.experimental.pallas import tpu as pltpu


def _hybrid_forward_kernel(
    gan_ref,      # SMEM (4,)        folded GAN conv: [w_r', w_g', w_b', b'] (sigmoid form)
    rgb_ref,      # VMEM (TB, 3*Pp)  [R plane | G plane | B plane] on the lane axis
    w_rgb_ref,    # VMEM (3, NC)     rgb_model linear weight
    b_rgb_ref,    # VMEM (1, NC)     rgb_model linear bias
    w_fus_ref,    # VMEM (4, NC)     fusion_model linear weight (rgb rows first, nir last)
    b_fus_ref,    # VMEM (1, NC)     fusion_model linear bias
    logits_ref,   # VMEM (TB, NC)    output logits
    nir_ref,      # VMEM (TB, Pp)    generated NIR (metadata['used_generated_nir'] path)
    *,
    threshold: float,
    inv_p: float,
    p: int,
    p_pad: int,
):
    x = rgb_ref[...]                         # (TB, 3*Pp) — lane-dense tile
    xr = x[:, 0:p_pad]                       # (TB, Pp), 128-aligned static lane slices
    xg = x[:, p_pad:2 * p_pad]
    xb = x[:, 2 * p_pad:3 * p_pad]

    # ---- generate_nir ----------------------------------------------------
    # Normalize(0.5,0.5) -> 1x1 conv -> tanh -> *0.5+0.5 is folded host-side into
    # nir = sigmoid(w'.x + b'): three VPU FMAs + one EUP push, no MXU, no extra
    # mul/sub pairs per vreg.
    w0 = gan_ref[0]
    w1 = gan_ref[1]
    w2 = gan_ref[2]
    bg = gan_ref[3]
    nir = jax.nn.sigmoid(xr * w0 + xg * w1 + xb * w2 + bg)      # (TB, Pp)
    nir_ref[...] = nir.astype(nir_ref.dtype)                    # lane-dense store

    # Padded lanes of the RGB input are zero, so their sums are already correct;
    # the NIR of a zero pixel is sigmoid(b') != 0, so mask it before the GAP sum.
    if p_pad != p:
        lane = jax.lax.broadcasted_iota(jnp.int32, nir.shape, dimension=1)
        nir_for_sum = jnp.where(lane < p, nir, 0.0)
    else:
        nir_for_sum = nir

    # ---- global average pooling: lane-axis reductions (XLU) * precomputed 1/P ----
    fr = jnp.sum(xr, axis=-1, keepdims=True) * inv_p            # (TB, 1)
    fg = jnp.sum(xg, axis=-1, keepdims=True) * inv_p
    fb = jnp.sum(xb, axis=-1, keepdims=True) * inv_p
    fn = jnp.sum(nir_for_sum, axis=-1, keepdims=True) * inv_p

    # ---- tiny classifier heads: outer-product accumulation on the VPU ----
    # (O(B*NC) FLOPs — not worth MXU traffic; split w_fus rows to avoid a concat.)
    logits_rgb = (fr * w_rgb_ref[0:1, :] + fg * w_rgb_ref[1:2, :]
                  + fb * w_rgb_ref[2:3, :] + b_rgb_ref[...])                 # (TB, NC)
    logits_fus = (fr * w_fus_ref[0:1, :] + fg * w_fus_ref[1:2, :]
                  + fb * w_fus_ref[2:3, :] + fn * w_fus_ref[3:4, :]
                  + b_fus_ref[...])                                          # (TB, NC)

    # ---- ConfidenceThreshold: max softmax prob == 1 / sum(exp(l - max(l))) ----
    m = jnp.max(logits_fus, axis=-1, keepdims=True)
    s = jnp.sum(jnp.exp(logits_fus - m), axis=-1, keepdims=True)
    conf = 1.0 / s                                                           # (TB, 1)
    use_primary = conf >= threshold
    logits_ref[...] = jnp.where(use_primary, logits_fus, logits_rgb)


def _tpu_vmem_capacity_bytes():
    """Physical VMEM of the current chip generation (conservative fallback)."""
    try:
        return int(pltpu.get_tpu_info().vmem_capacity_bytes)
    except Exception:
        return 64 * 1024 * 1024      # v7x-sized fallback (safe everywhere)


def _choose_batch_tile(B, p_pad, vmem_budget_bytes, min_grid_steps=2):
    """Pick (TB, B_pad).

    TB is either the whole batch (single full-dim tile, no padding needed) or a
    multiple of 8 (dense sublanes with the lane-folded layout).  When B is large
    enough, the grid is kept at >= min_grid_steps so both v7x TensorCores get work.
    """
    per_sample = (3 * p_pad + p_pad) * 4 * 2        # f32 rgb + nir tiles, double-buffered
    tb_cap = max(1, vmem_budget_bytes // per_sample)
    if min_grid_steps > 1 and B >= 2 * 8:
        tb_cap = min(tb_cap, max(8, (B // min_grid_steps) // 8 * 8))
    if B <= tb_cap:
        return B, B                                  # one tile; block dim == array dim
    tb = max(8, (tb_cap // 8) * 8)
    # TODO(synk): for very large images (512x512+) additionally tile P on a second
    # "arbitrary" grid axis with partial-sum accumulation in VMEM scratch so the
    # per-step working set stays bounded; not needed at these sizes.
    b_pad = ((B + tb - 1) // tb) * tb
    return tb, b_pad


def hybrid_model_forward(rgb_nchw, params, *, threshold=0.7, nir_dtype=jnp.float32):
    """rgb_nchw: (B, 3, H, W) float32 in [0, 1] (PyTorch NCHW convention)."""
    B, C, H, W = rgb_nchw.shape
    assert C == 3
    P = H * W
    NC = params["w_rgb"].shape[1]

    # Lane-folded layout: (B, 3*Pp) with Pp a multiple of 128 (free reshape when
    # P is already a multiple of 128; zero lane-pad otherwise).
    p_pad = ((P + 127) // 128) * 128
    rgb_planar = rgb_nchw.reshape(B, C, P)
    if p_pad != P:
        rgb_planar = jnp.pad(rgb_planar, ((0, 0), (0, 0), (0, p_pad - P)))
    rgb_flat = rgb_planar.reshape(B, C * p_pad)

    # Fold Normalize(0.5,0.5) and the post-tanh affine into the GAN conv:
    #   tanh(w.(2x-1)+b)*0.5+0.5 == sigmoid((4w).x + 2(b - sum(w)))
    w_gan = params["w_gan"].reshape(3).astype(jnp.float32)
    b_gan = params["b_gan"].reshape(()).astype(jnp.float32)
    gan_packed = jnp.concatenate(
        [4.0 * w_gan, jnp.reshape(2.0 * (b_gan - jnp.sum(w_gan)), (1,))]
    )

    # Generation-aware tiling: 3/8 of physical VMEM for the double-buffered tiles,
    # scoped limit at half of physical (big tiles on v5e/v6e, safe on v7x's 64 MiB).
    vmem_phys = _tpu_vmem_capacity_bytes()
    vmem_budget = (vmem_phys * 3) // 8
    vmem_limit = vmem_phys // 2
    TB, B_pad = _choose_batch_tile(B, p_pad, vmem_budget, min_grid_steps=2)
    if B_pad != B:
        rgb_flat = jnp.pad(rgb_flat, ((0, B_pad - B), (0, 0)))
    grid = (B_pad // TB,)

    smem = pl.BlockSpec(memory_space=pltpu.MemorySpace.SMEM)
    kernel = functools.partial(
        _hybrid_forward_kernel,
        threshold=float(threshold),
        inv_p=1.0 / float(P),
        p=P,
        p_pad=p_pad,
    )

    logits_pad, nir_pad = pl.pallas_call(
        kernel,
        out_shape=(
            jax.ShapeDtypeStruct((B_pad, NC), jnp.float32),
            jax.ShapeDtypeStruct((B_pad, p_pad), nir_dtype),
        ),
        grid_spec=pltpu.PrefetchScalarGridSpec(
            num_scalar_prefetch=0,
            grid=grid,
            in_specs=[
                smem,                                           # gan weights (SMEM scalars)
                pl.BlockSpec((TB, C * p_pad), lambda i: (i, 0)),  # rgb, lane-folded
                pl.BlockSpec((3, NC), lambda i: (0, 0)),        # w_rgb
                pl.BlockSpec((1, NC), lambda i: (0, 0)),        # b_rgb
                pl.BlockSpec((4, NC), lambda i: (0, 0)),        # w_fus
                pl.BlockSpec((1, NC), lambda i: (0, 0)),        # b_fus
            ],
            out_specs=(
                pl.BlockSpec((TB, NC), lambda i: (i, 0)),       # logits (sublane-packed)
                pl.BlockSpec((TB, p_pad), lambda i: (i, 0)),    # nir (lane-dense)
            ),
        ),
        compiler_params=pltpu.CompilerParams(
            dimension_semantics=("parallel",),
            vmem_limit_bytes=int(vmem_limit),
        ),
    )(
        gan_packed, rgb_flat,
        params["w_rgb"], params["b_rgb"],
        params["w_fus"], params["b_fus"],
    )

    logits = logits_pad[:B]
    nir = nir_pad[:B, :P].reshape(B, 1, H, W)    # free when no padding was needed
    return logits, nir


def _reference_forward(rgb_nchw, params, *, threshold=0.7):
    """Pure-JAX reference mirroring HybridModel.forward semantics."""
    B, C, H, W = rgb_nchw.shape
    x = jnp.transpose(rgb_nchw, (0, 2, 3, 1)).reshape(B, H * W, C)
    x_norm = 2.0 * x - 1.0
    nir = jnp.tanh(x_norm @ params["w_gan"] + params["b_gan"]) * 0.5 + 0.5   # (B,P,1)
    feat_rgb = jnp.mean(x, axis=1)
    feat_fus = jnp.concatenate([feat_rgb, jnp.mean(nir, axis=1)], axis=-1)
    logits_rgb = feat_rgb @ params["w_rgb"] + params["b_rgb"]
    logits_fus = feat_fus @ params["w_fus"] + params["b_fus"]
    conf = jnp.max(jax.nn.softmax(logits_fus, axis=-1), axis=-1, keepdims=True)
    logits = jnp.where(conf >= threshold, logits_fus, logits_rgb)
    nir_nchw = jnp.transpose(nir.reshape(B, H, W, 1), (0, 3, 1, 2))
    return logits, nir_nchw


def _init_params(key, num_classes):
    ks = jax.random.split(key, 6)
    scale = 0.2
    return {
        "w_gan": scale * jax.random.normal(ks[0], (3, 1), jnp.float32),
        "b_gan": scale * jax.random.normal(ks[1], (1, 1), jnp.float32),
        "w_rgb": scale * jax.random.normal(ks[2], (3, num_classes), jnp.float32),
        "b_rgb": scale * jax.random.normal(ks[3], (1, num_classes), jnp.float32),
        "w_fus": scale * jax.random.normal(ks[4], (4, num_classes), jnp.float32),
        "b_fus": scale * jax.random.normal(ks[5], (1, num_classes), jnp.float32),
    }


def _run_case(key, B, H, W, num_classes, threshold, atol):
    k_in, k_par = jax.random.split(key)
    rgb = jax.random.uniform(k_in, (B, 3, H, W), jnp.float32)   # image-like, in [0, 1]
    params = _init_params(k_par, num_classes)

    logits, nir = hybrid_model_forward(rgb, params, threshold=threshold)
    logits = jax.block_until_ready(logits)
    nir = jax.block_until_ready(nir)

    ref_logits, ref_nir = _reference_forward(rgb, params, threshold=threshold)
    assert logits.shape == (B, num_classes)
    assert nir.shape == (B, 1, H, W)
    assert jnp.allclose(logits, ref_logits, atol=atol, rtol=1e-5)
    assert jnp.allclose(nir, ref_nir, atol=atol, rtol=1e-5)


if __name__ == "__main__":
    key = jax.random.PRNGKey(0)
    k0, k1 = jax.random.split(key)

    # Small canonical case: P = 256 (multiple of 128), whole batch in one tile.
    _run_case(k0, B=2, H=16, W=16, num_classes=8, threshold=0.7, atol=1e-5)

    # Padding / multi-tile case: P = 400 -> lane-padded to 512, B = 20 -> batch
    # padded to 24 with TB = 8 (grid of 3 parallel steps).
    _run_case(k1, B=20, H=20, W=20, num_classes=5, threshold=0.7, atol=1e-5)

    # TODO(synk): validate_fusion / get_fallback_stats are host-side bookkeeping
    # (DataLoader iteration, counters) with no kernel equivalent; not implemented.
    print("KERNEL_OK")
</pallas_src>

<mosaic_0001>
module attributes {stable_mosaic.version = 11 : i64} {
  func.func @_hybrid_forward_kernel(%arg0: i32, %arg1: memref<4xf32, #tpu.memory_space<smem>>, %arg2: memref<2x768xf32, #tpu.memory_space<vmem>>, %arg3: memref<3x8xf32, #tpu.memory_space<vmem>>, %arg4: memref<1x8xf32, #tpu.memory_space<vmem>>, %arg5: memref<4x8xf32, #tpu.memory_space<vmem>>, %arg6: memref<1x8xf32, #tpu.memory_space<vmem>>, %arg7: memref<2x8xf32, #tpu.memory_space<vmem>>, %arg8: memref<2x256xf32, #tpu.memory_space<vmem>>) attributes {dimension_semantics = [#tpu.dimension_semantics<parallel>], iteration_bounds = array<i64: 1>, scalar_prefetch = 0 : i64, scratch_operands = 0 : i64, tpu.core_type = #tpu.core_type<tc>, window_params = [{transform_indices = @transform_0, window_bounds = array<i64: 4>}, {transform_indices = @transform_1, window_bounds = array<i64: 2, 768>}, {pipeline_mode = #tpu.pipeline_mode<synchronous>, transform_indices = @transform_2, window_bounds = array<i64: 3, 8>}, {pipeline_mode = #tpu.pipeline_mode<synchronous>, transform_indices = @transform_3, window_bounds = array<i64: 1, 8>}, {pipeline_mode = #tpu.pipeline_mode<synchronous>, transform_indices = @transform_4, window_bounds = array<i64: 4, 8>}, {pipeline_mode = #tpu.pipeline_mode<synchronous>, transform_indices = @transform_5, window_bounds = array<i64: 1, 8>}, {transform_indices = @transform_6, window_bounds = array<i64: 2, 8>}, {transform_indices = @transform_7, window_bounds = array<i64: 2, 256>}]} {
    %c0 = arith.constant 0 : index
    %c0_0 = arith.constant 0 : index
    %0 = vector.load %arg2[%c0, %c0_0] : memref<2x768xf32, #tpu.memory_space<vmem>>, vector<2x768xf32>
    %1 = vector.extract_strided_slice %0 {offsets = [0, 0], sizes = [2, 256], strides = [1, 1]} : vector<2x768xf32> to vector<2x256xf32>
    %2 = vector.extract_strided_slice %0 {offsets = [0, 256], sizes = [2, 256], strides = [1, 1]} : vector<2x768xf32> to vector<2x256xf32>
    %3 = vector.extract_strided_slice %0 {offsets = [0, 512], sizes = [2, 256], strides = [1, 1]} : vector<2x768xf32> to vector<2x256xf32>
    %c0_1 = arith.constant 0 : index
    %4 = memref.load %arg1[%c0_1] : memref<4xf32, #tpu.memory_space<smem>>
    %c1 = arith.constant 1 : index
    %5 = memref.load %arg1[%c1] : memref<4xf32, #tpu.memory_space<smem>>
    %c2 = arith.constant 2 : index
    %6 = memref.load %arg1[%c2] : memref<4xf32, #tpu.memory_space<smem>>
    %c3 = arith.constant 3 : index
    %7 = memref.load %arg1[%c3] : memref<4xf32, #tpu.memory_space<smem>>
    %8 = vector.broadcast %4 : f32 to vector<2x256xf32>
    %9 = arith.mulf %1, %8 : vector<2x256xf32>
    %10 = vector.broadcast %5 : f32 to vector<2x256xf32>
    %11 = arith.mulf %2, %10 : vector<2x256xf32>
    %12 = arith.addf %9, %11 : vector<2x256xf32>
    %13 = vector.broadcast %6 : f32 to vector<2x256xf32>
    %14 = arith.mulf %3, %13 : vector<2x256xf32>
    %15 = arith.addf %12, %14 : vector<2x256xf32>
    %16 = vector.broadcast %7 : f32 to vector<2x256xf32>
    %17 = arith.addf %15, %16 : vector<2x256xf32>
    %18 = arith.negf %17 : vector<2x256xf32>
    %19 = math.exp %18 : vector<2x256xf32>
    %cst = arith.constant 1.000000e+00 : f32
    %20 = vector.broadcast %cst : f32 to vector<2x256xf32>
    %21 = arith.addf %20, %19 : vector<2x256xf32>
    %22 = arith.divf %20, %21 : vector<2x256xf32>
    %c0_2 = arith.constant 0 : index
    %c0_3 = arith.constant 0 : index
    %23 = vector.load %arg8[%c0_2, %c0_3] : memref<2x256xf32, #tpu.memory_space<vmem>>, vector<2x256xf32>
    tpu.vector_store %arg8[%c0_2, %c0_3], %22 {strides = array<i32>} : memref<2x256xf32, #tpu.memory_space<vmem>>, vector<2x256xf32>,
    %cst_4 = arith.constant dense<0.000000e+00> : vector<2xf32>
    %24 = vector.multi_reduction <add>, %1, %cst_4 [1] : vector<2x256xf32> to vector<2xf32>
    %25 = vector.shape_cast %24 : vector<2xf32> to vector<2x1xf32>
    %cst_5 = arith.constant 3.906250e-03 : f32
    %26 = vector.broadcast %cst_5 : f32 to vector<2x1xf32>
    %27 = arith.mulf %25, %26 : vector<2x1xf32>
    %cst_6 = arith.constant dense<0.000000e+00> : vector<2xf32>
    %28 = vector.multi_reduction <add>, %2, %cst_6 [1] : vector<2x256xf32> to vector<2xf32>
    %29 = vector.shape_cast %28 : vector<2xf32> to vector<2x1xf32>
    %cst_7 = arith.constant 3.906250e-03 : f32
    %30 = vector.broadcast %cst_7 : f32 to vector<2x1xf32>
    %31 = arith.mulf %29, %30 : vector<2x1xf32>
    %cst_8 = arith.constant dense<0.000000e+00> : vector<2xf32>
    %32 = vector.multi_reduction <add>, %3, %cst_8 [1] : vector<2x256xf32> to vector<2xf32>
    %33 = vector.shape_cast %32 : vector<2xf32> to vector<2x1xf32>
    %cst_9 = arith.constant 3.906250e-03 : f32
    %34 = vector.broadcast %cst_9 : f32 to vector<2x1xf32>
    %35 = arith.mulf %33, %34 : vector<2x1xf32>
    %cst_10 = arith.constant dense<0.000000e+00> : vector<2xf32>
    %36 = vector.multi_reduction <add>, %22, %cst_10 [1] : vector<2x256xf32> to vector<2xf32>
    %37 = vector.shape_cast %36 : vector<2xf32> to vector<2x1xf32>
    %cst_11 = arith.constant 3.906250e-03 : f32
    %38 = vector.broadcast %cst_11 : f32 to vector<2x1xf32>
    %39 = arith.mulf %37, %38 : vector<2x1xf32>
    %c0_12 = arith.constant 0 : index
    %c0_13 = arith.constant 0 : index
    %40 = vector.load %arg3[%c0_12, %c0_13] : memref<3x8xf32, #tpu.memory_space<vmem>>, vector<1x8xf32>
    %41 = vector.broadcast %27 : vector<2x1xf32> to vector<2x8xf32>
    %42 = vector.broadcast %40 : vector<1x8xf32> to vector<2x8xf32>
    %43 = arith.mulf %41, %42 : vector<2x8xf32>
    %c1_14 = arith.constant 1 : index
    %c0_15 = arith.constant 0 : index
    %44 = vector.load %arg3[%c1_14, %c0_15] : memref<3x8xf32, #tpu.memory_space<vmem>>, vector<1x8xf32>
    %45 = vector.broadcast %31 : vector<2x1xf32> to vector<2x8xf32>
    %46 = vector.broadcast %44 : vector<1x8xf32> to vector<2x8xf32>
    %47 = arith.mulf %45, %46 : vector<2x8xf32>
    %48 = arith.addf %43, %47 : vector<2x8xf32>
    %c2_16 = arith.constant 2 : index
    %c0_17 = arith.constant 0 : index
    %49 = vector.load %arg3[%c2_16, %c0_17] : memref<3x8xf32, #tpu.memory_space<vmem>>, vector<1x8xf32>
    %50 = vector.broadcast %35 : vector<2x1xf32> to vector<2x8xf32>
    %51 = vector.broadcast %49 : vector<1x8xf32> to vector<2x8xf32>
    %52 = arith.mulf %50, %51 : vector<2x8xf32>
    %53 = arith.addf %48, %52 : vector<2x8xf32>
    %c0_18 = arith.constant 0 : index
    %c0_19 = arith.constant 0 : index
    %54 = vector.load %arg4[%c0_18, %c0_19] : memref<1x8xf32, #tpu.memory_space<vmem>>, vector<1x8xf32>
    %55 = vector.broadcast %54 : vector<1x8xf32> to vector<2x8xf32>
    %56 = arith.addf %53, %55 : vector<2x8xf32>
    %c0_20 = arith.constant 0 : index
    %c0_21 = arith.constant 0 : index
    %57 = vector.load %arg5[%c0_20, %c0_21] : memref<4x8xf32, #tpu.memory_space<vmem>>, vector<1x8xf32>
    %58 = vector.broadcast %27 : vector<2x1xf32> to vector<2x8xf32>
    %59 = vector.broadcast %57 : vector<1x8xf32> to vector<2x8xf32>
    %60 = arith.mulf %58, %59 : vector<2x8xf32>
    %c1_22 = arith.constant 1 : index
    %c0_23 = arith.constant 0 : index
    %61 = vector.load %arg5[%c1_22, %c0_23] : memref<4x8xf32, #tpu.memory_space<vmem>>, vector<1x8xf32>
    %62 = vector.broadcast %31 : vector<2x1xf32> to vector<2x8xf32>
    %63 = vector.broadcast %61 : vector<1x8xf32> to vector<2x8xf32>
    %64 = arith.mulf %62, %63 : vector<2x8xf32>
    %65 = arith.addf %60, %64 : vector<2x8xf32>
    %c2_24 = arith.constant 2 : index
    %c0_25 = arith.constant 0 : index
    %66 = vector.load %arg5[%c2_24, %c0_25] : memref<4x8xf32, #tpu.memory_space<vmem>>, vector<1x8xf32>
    %67 = vector.broadcast %35 : vector<2x1xf32> to vector<2x8xf32>
    %68 = vector.broadcast %66 : vector<1x8xf32> to vector<2x8xf32>
    %69 = arith.mulf %67, %68 : vector<2x8xf32>
    %70 = arith.addf %65, %69 : vector<2x8xf32>
    %c3_26 = arith.constant 3 : index
    %c0_27 = arith.constant 0 : index
    %71 = vector.load %arg5[%c3_26, %c0_27] : memref<4x8xf32, #tpu.memory_space<vmem>>, vector<1x8xf32>
    %72 = vector.broadcast %39 : vector<2x1xf32> to vector<2x8xf32>
    %73 = vector.broadcast %71 : vector<1x8xf32> to vector<2x8xf32>
    %74 = arith.mulf %72, %73 : vector<2x8xf32>
    %75 = arith.addf %70, %74 : vector<2x8xf32>
    %c0_28 = arith.constant 0 : index
    %c0_29 = arith.constant 0 : index
    %76 = vector.load %arg6[%c0_28, %c0_29] : memref<1x8xf32, #tpu.memory_space<vmem>>, vector<1x8xf32>
    %77 = vector.broadcast %76 : vector<1x8xf32> to vector<2x8xf32>
    %78 = arith.addf %75, %77 : vector<2x8xf32>
    %cst_30 = arith.constant dense<0xFF800000> : vector<2xf32>
    %79 = vector.multi_reduction <maximumf>, %78, %cst_30 [1] : vector<2x8xf32> to vector<2xf32>
    %80 = vector.shape_cast %79 : vector<2xf32> to vector<2x1xf32>
    %81 = vector.broadcast %80 : vector<2x1xf32> to vector<2x8xf32>
    %82 = arith.subf %78, %81 : vector<2x8xf32>
    %83 = math.exp %82 : vector<2x8xf32>
    %cst_31 = arith.constant dense<0.000000e+00> : vector<2xf32>
    %84 = vector.multi_reduction <add>, %83, %cst_31 [1] : vector<2x8xf32> to vector<2xf32>
    %85 = vector.shape_cast %84 : vector<2xf32> to vector<2x1xf32>
    %cst_32 = arith.constant 1.000000e+00 : f32
    %86 = vector.broadcast %cst_32 : f32 to vector<2x1xf32>
    %87 = arith.divf %86, %85 : vector<2x1xf32>
    %cst_33 = arith.constant 0.699999988 : f32
    %88 = vector.broadcast %cst_33 : f32 to vector<2x1xf32>
    %89 = arith.cmpf oge, %87, %88 : vector<2x1xf32>
    %90 = vector.shape_cast %89 : vector<2x1xi1> to vector<2x1xi1>
    %91 = vector.broadcast %90 : vector<2x1xi1> to vector<2x8xi1>
    %92 = arith.select %91, %78, %56 : vector<2x8xi1>, vector<2x8xf32>
    %c0_34 = arith.constant 0 : index
    %c0_35 = arith.constant 0 : index
    %93 = vector.load %arg7[%c0_34, %c0_35] : memref<2x8xf32, #tpu.memory_space<vmem>>, vector<2x8xf32>
    tpu.vector_store %arg7[%c0_34, %c0_35], %92 {strides = array<i32>} : memref<2x8xf32, #tpu.memory_space<vmem>>, vector<2x8xf32>,
    return
  }
  func.func @transform_0(%arg0: i32) -> i32 {
    %c0_i32 = arith.constant 0 : i32
    %c0_i32_0 = arith.constant 0 : i32
    return %c0_i32 : i32
  }
  func.func @transform_1(%arg0: i32) -> (i32, i32) {
    %c0_i32 = arith.constant 0 : i32
    %c0_i32_0 = arith.constant 0 : i32
    return %arg0, %c0_i32 : i32, i32
  }
  func.func @transform_2(%arg0: i32) -> (i32, i32) {
    %c0_i32 = arith.constant 0 : i32
    %c0_i32_0 = arith.constant 0 : i32
    %c0_i32_1 = arith.constant 0 : i32
    return %c0_i32, %c0_i32_0 : i32, i32
  }
  func.func @transform_3(%arg0: i32) -> (i32, i32) {
    %c0_i32 = arith.constant 0 : i32
    %c0_i32_0 = arith.constant 0 : i32
    %c0_i32_1 = arith.constant 0 : i32
    return %c0_i32, %c0_i32_0 : i32, i32
  }
  func.func @transform_4(%arg0: i32) -> (i32, i32) {
    %c0_i32 = arith.constant 0 : i32
    %c0_i32_0 = arith.constant 0 : i32
    %c0_i32_1 = arith.constant 0 : i32
    return %c0_i32, %c0_i32_0 : i32, i32
  }
  func.func @transform_5(%arg0: i32) -> (i32, i32) {
    %c0_i32 = arith.constant 0 : i32
    %c0_i32_0 = arith.constant 0 : i32
    %c0_i32_1 = arith.constant 0 : i32
    return %c0_i32, %c0_i32_0 : i32, i32
  }
  func.func @transform_6(%arg0: i32) -> (i32, i32) {
    %c0_i32 = arith.constant 0 : i32
    %c0_i32_0 = arith.constant 0 : i32
    return %arg0, %c0_i32 : i32, i32
  }
  func.func @transform_7(%arg0: i32) -> (i32, i32) {
    %c0_i32 = arith.constant 0 : i32
    %c0_i32_0 = arith.constant 0 : i32
    return %arg0, %c0_i32 : i32, i32
  }
}

</mosaic_0001>

<bundles_post_ra>
// kernel: tpu_custom_call.1
= control target key start
LH: loop header
LB: loop body
LE: loop exit
PB: predicated region body
PF: predicated region fallthrough
CT: control target
= control target key end

     0   :  { %13 = vsyncpa [#allocation5], 0  ;;  %s496_s0 = inlined_call_operand.hbm [shape: f32[4], index: 0, kind: input, shape index: {}]   ;;  %s497_s1 = inlined_call_operand.hbm [shape: f32[2,768], index: 1, kind: input, shape index: {}]   ;;  %s498_s2 = inlined_call_operand.vmem [shape: f32[3,8], index: 2, kind: input, shape index: {}]   ;;  %s499_s3 = inlined_call_operand.vmem [shape: f32[1,8], index: 3, kind: input, shape index: {}]   ;;  %s500_s4 = inlined_call_operand.vmem [shape: f32[4,8], index: 4, kind: input, shape index: {}]   ;;  %s501_s5 = inlined_call_operand.vmem [shape: f32[1,8], index: 5, kind: input, shape index: {}]   ;;  %s502_s6 = inlined_call_operand.hbm [shape: f32[2,8], index: 6, kind: output, shape index: {0}]   ;;  %s503_s7 = inlined_call_operand.hbm [shape: f32[2,256], index: 7, kind: output, shape index: {1}]  }
   0x1   :  { %14 = vsyncpa [#allocation3], 0 }
   0x2   :  { %15 = vsyncpa [#allocation4], 0 }
   0x3   :  { %16 = vsyncpa [#allocation9], 0  ;;  %s281_s26 = scalar_lea.hbm %s496_s0, 16 }
   0x4   :  { %p282_p0 = scmp.ne.s32.totalorder %s496_s0, %s281_s26  ;;  %p285_p1 = scmp.lt.u32.totalorder %s281_s26, %s496_s0 }
   0x6   :  { %p287_p2 = pnand %p285_p1, %p282_p0 }
   0x8   :  { %290 = shalt.err (!%p287_p2)
}
   0x9   :  { %s365_s8 = smov [#allocation2]   ;;  %s366_s11 = smov [#allocation6]  }
   0xa   :  { %24 = dma.hbm_to_smem %s496_s0, 16, %s365_s8, [#allocation5]  }
   0xb   :  { %s31_s12 = sshll.u32 %s366_s11, 4  ;;  %s291_s15 = scalar_lea.hbm %s497_s1, 192  ;;  %s32_s12 = int_to_ptr.vmem [resolvable:$true] %s31_s12 }
   0xc   :  { %p292_p3 = scmp.ne.s32.totalorder %s497_s1, %s291_s15  ;;  %p295_p4 = scmp.lt.u32.totalorder %s291_s15, %s497_s1 }
   0xe   :  { %p297_p5 = pnand %p295_p4, %p292_p3 }
  0x10   :  { %300 = shalt.err (!%p297_p5)
}
  0x11   :  { %s301_s20 = scalar_lea.vmem %s32_s12, 192  ;;  %p306_p7 = scmp.lt.s32.totalorder %s32_s12, %s32_s12 }
  0x12   :  { %p302_p6 = scmp.ne.s32.totalorder %s32_s12, %s301_s20  ;;  %p307_p8 = scmp.lt.s32.totalorder %s301_s20, %s301_s20 }
  0x14   :  { %p308_p9 = por %p307_p8, %p306_p7 }
  0x16   :  { %p309_p10 = pnand %p308_p9, %p302_p6 }
  0x18   :  { %312 = shalt.err (!%p309_p10)
}
  0x19   :  { %34 = dma.hbm_to_vmem [thread:$0]  %s497_s1, 192, %s32_s12, [#allocation3]  }
  0x1a   :  { %357 = dma.done.wait [#allocation5], 16  }
  0x1b   :  { %358 = vsyncadd [#allocation5], 4294967280 }
  0x1c   :  { %359 = dma.done.wait [#allocation3], 192  }
  0x1d   :  { %360 = vsyncadd [#allocation3], 4294967104 }
  0x1e   :  { %49 = sfence }
  0x1f   :  { %v79_v0 = vlaneseq  ;;  %v367_v1 = vmov 1983009808   ;;  %s52_s22 = sld [smem:[#allocation2]]  ;;  %s254_s23 = sld [smem:[#allocation2 + $0x1]]  ;;  %v50_v3 = vld [vmem:[#allocation6] sm:$0xff]  ;;  %vm86_vm0 = vcmask 1041408  }
  0x20   :  { %v77_v2 = vunpack.c.l.s4 %v367_v1  ;;  %s255_s24 = sld [smem:[#allocation2 + $0x2]]  ;;  %v93_v6 = vcombine.high %v50_v3, %v50_v3  ;;  %s256_s25 = sld [smem:[#allocation2 + $0x3]]  ;;  %v60_v8 = vrot.slane %v50_v3, 4  ;;  %v51_v11 = vld [vmem:[#allocation6 + $0x8] sm:$0xf]  ;;  %vm207_vm1 = vcmask 58368  }
  0x21   :  { %v80_v4 = vshrl.u32 %v79_v0, 7  ;;  %v258_v47 = vld [vmem:[%s498_s2] ss:$0 sm:$0xff]  ;;  %v259_v49 = vld [vmem:[%s498_s2 + $0x1] ss:$0 sm:$0xff] }
  0x22   :  { %v78_v5 = vunpack.c.0.s8 %v77_v2  ;;  %v260_v51 = vld [vmem:[%s498_s2 + $0x2] ss:$0 sm:$0xff]  ;;  %v262_v58 = vld [vmem:[%s500_s4] ss:$0 sm:$0xff]  ;;  %v263_v59 = vld [vmem:[%s500_s4 + $0x1] ss:$0 sm:$0xff] }
  0x23   :  { %v264_v62 = vld [vmem:[%s500_s4 + $0x2] ss:$0 sm:$0xff]  ;;  %v265_v1 = vld [vmem:[%s500_s4 + $0x3] ss:$0 sm:$0xff]  ;;  %s368_s4 = smov [#allocation8]  }
  0x24   :  { %v81_v7 = vsub.s32 %v78_v5, %v80_v4  ;;  %s240_s17 = sshll.u32 %s368_s4, 4  ;;  %s241_s17 = int_to_ptr.vmem [resolvable:$true] %s240_s17 }
  0x25   :  { %v56_v12 = vstv %s52_s22  ;;  %v58_v13 = vstv %s254_s23  ;;  %s313_s18 = scalar_lea.vmem %s241_s17, 64  ;;  %p318_p12 = scmp.lt.s32.totalorder %s241_s17, %s241_s17 }
  0x26   :  { %v82_v9 = vrot.slane %v50_v3, %v81_v7  ;;  %v100_v10 = vrot.slane %v93_v6, %v81_v7  ;;  %v64_v14 = vstv %s255_s24  ;;  %v117_v15 = vrot.slane %v51_v11, %v81_v7  ;;  %v266_v6 = vld [vmem:[%s501_s5] ss:$0 sm:$0xff]  ;;  %p314_p11 = scmp.ne.s32.totalorder %s241_s17, %s313_s18  ;;  %p319_p13 = scmp.lt.s32.totalorder %s313_s18, %s313_s18 }
  0x27   :  { %v57_v16 = vmul.f32 %v56_v12, %v50_v3  ;;  %v62_v22 = vmul.f32 %v60_v8, %v58_v13  ;;  %v65_v23 = vmul.f32 %v64_v14, %v51_v11  ;;  %v67_v30 = vstv %s256_s25 }
  0x28   :  { %v83_v17 = vcombine.high %v82_v9, %v82_v9  ;;  %v87_v18 = vsel %vm86_vm0, %v82_v9, 0.0  ;;  %v101_v19 = vcombine.high %v100_v10, %v100_v10  ;;  %v118_v20 = vcombine.high %v117_v15, %v117_v15  ;;  %p320_p0 = por %p319_p13, %p318_p12 }
  0x29   :  { %v121_v21 = vsel %vm86_vm0, %v117_v15, 0.0  ;;  %v104_v25 = vsel %vm86_vm0, %v100_v10, 0.0  ;;  %v63_v29 = vadd.f32 %v62_v22, %v57_v16 }
  0x2a   :  { %v88_v24 = vsel %vm86_vm0, %v83_v17, 0.0  ;;  %v105_v26 = vsel %vm86_vm0, %v101_v19, 0.0  ;;  %v122_v28 = vsel %vm86_vm0, %v118_v20, 0.0  ;;  %p321_p1 = pnand %p320_p0, %p314_p11 }
  0x2b   :  { %v89_v27 = vadd.f32 %v88_v24, %v87_v18  ;;  %v123_v31 = vadd.f32 %v122_v28, %v121_v21  ;;  %v106_v32 = vadd.f32 %v105_v26, %v104_v25  ;;  %v66_v33 = vadd.f32 %v65_v23, %v63_v29 }
  0x2d   :  { %90 = vadd.xlane.f32.xlu0 %v89_v27  ;;  %124 = vadd.xlane.f32.xlu1 %v123_v31  ;;  %v68_v34 = vadd.f32 %v67_v30, %v66_v33 }
  0x2f   :  { %v257_v35 = vmul.f32 -1.442695, %v68_v34 }
  0x31   :  { %107 = vadd.xlane.f32.xlu0 %v106_v32  ;;  %273 = vpow2.f32 %v257_v35 }
  0x3b   :  { %v274_v36 = vpop.eup %273 }
  0x3c   :  { %v72_v37 = vadd.f32 1.0, %v274_v36 }
  0x3e   :  { %275 = vrcp.f32 %v72_v37 }
  0x48   :  { %v276_v38 = vpop.eup %275 }
  0x49   :  { %75 = vst [vmem:[#allocation8] sm:$0xf] %v276_v38  ;;  %v134_v39 = vrot.slane %v276_v38, %v81_v7 }
  0x4b   :  { %v135_v40 = vcombine.high %v134_v39, %v134_v39  ;;  %v138_v41 = vsel %vm86_vm0, %v134_v39, 0.0 }
  0x4d   :  { %v139_v42 = vsel %vm86_vm0, %v135_v40, 0.0 }
  0x4e   :  { %v140_v43 = vadd.f32 %v139_v42, %v138_v41 }
  0x50   :  { %141 = vadd.xlane.f32.xlu1 %v140_v43 }
  0xba   :  { %v91_v44 = vpop.xlane.xlu0 %90  ;;  %v125_v46 = vpop.xlane.xlu1 %124 }
  0xbb   :  { %v92_v45 = vmul.f32 0.00390625, %v91_v44  ;;  %v126_v48 = vmul.f32 0.00390625, %v125_v46 }
  0xbd   :  { %v149_v52 = vmul.f32 %v258_v47, %v92_v45  ;;  %v162_v55 = vmul.f32 %v260_v51, %v126_v48  ;;  %v177_v60 = vmul.f32 %v262_v58, %v92_v45  ;;  %v190_v0 = vmul.f32 %v264_v62, %v126_v48 }
  0xbe   :  { %v108_v50 = vpop.xlane.xlu0 %107 }
  0xbf   :  { %v109_v53 = vmul.f32 0.00390625, %v108_v50 }
  0xc1   :  { %v155_v54 = vmul.f32 %v259_v49, %v109_v53  ;;  %v183_v61 = vmul.f32 %v263_v59, %v109_v53 }
  0xc3   :  { %v156_v56 = vadd.f32 %v155_v54, %v149_v52  ;;  %v184_v63 = vadd.f32 %v183_v61, %v177_v60 }
  0xc5   :  { %v163_v57 = vadd.f32 %v162_v55, %v156_v56  ;;  %v191_v4 = vadd.f32 %v190_v0, %v184_v63 }
  0xdd   :  { %v142_v2 = vpop.xlane.xlu1 %141 }
  0xde   :  { %v143_v3 = vmul.f32 0.00390625, %v142_v2 }
  0xe0   :  { %v197_v5 = vmul.f32 %v265_v1, %v143_v3 }
  0xe2   :  { %v198_v7 = vadd.f32 %v197_v5, %v191_v4 }
  0xe4   :  { %v206_v8 = vadd.f32 %v266_v6, %v198_v7 }
  0xe6   :  { %v208_v9 = vsel %vm207_vm1, %v206_v8, -inf }
  0xe7   :  { %209 = vmax.xlane.f32.xlu0 %v208_v9 }
 0x174   :  { %v210_v10 = vpop.xlane.xlu0 %209 }
 0x175   :  { %v211_v11 = vsub.f32 %v206_v8, %v210_v10 }
 0x177   :  { %v212_v12 = vmul.f32 1.442695, %v211_v11 }
 0x179   :  { %277 = vpow2.f32 %v212_v12 }
 0x183   :  { %v278_v13 = vpop.eup %277 }
 0x184   :  { %v214_v14 = vsel %vm207_vm1, %v278_v13, 0.0 }
 0x185   :  { %215 = vadd.xlane.f32.xlu1 %v214_v14 }
 0x186   :  { %324 = shalt.err (!%p321_p1)
}
 0x187   :  { %s325_s20 = scalar_lea.hbm %s503_s7, 64 }
 0x188   :  { %p326_p2 = scmp.ne.s32.totalorder %s503_s7, %s325_s20  ;;  %p329_p3 = scmp.lt.u32.totalorder %s325_s20, %s503_s7 }
 0x18a   :  { %p331_p4 = pnand %p329_p3, %p326_p2 }
 0x18c   :  { %334 = shalt.err (!%p331_p4)
}
 0x18d   :  { %243 = dma.vmem_to_hbm [thread:$0]  %s241_s17, 64, %s503_s7, [#allocation9]   ;;  %v261_v16 = vld [vmem:[%s499_s3] ss:$0 sm:$0xff] }
 0x18e   :  { %s369_s27 = smov [#allocation7]   ;;  %v171_v18 = vadd.f32 %v261_v16, %v163_v57 }
 0x18f   :  { %s230_s28 = sshll.u32 %s369_s27, 4  ;;  %s231_s28 = int_to_ptr.vmem [resolvable:$true] %s230_s28 }
 0x190   :  { %s335_s29 = scalar_lea.vmem %s231_s28, 32  ;;  %p340_p6 = scmp.lt.s32.totalorder %s231_s28, %s231_s28 }
 0x191   :  { %p336_p5 = scmp.ne.s32.totalorder %s231_s28, %s335_s29  ;;  %p341_p7 = scmp.lt.s32.totalorder %s335_s29, %s335_s29 }
 0x193   :  { %p342_p8 = por %p341_p7, %p340_p6 }
 0x195   :  { %p343_p9 = pnand %p342_p8, %p336_p5 }
 0x212   :  { %v216_v15 = vpop.xlane.xlu1 %215 }
 0x213   :  { %279 = vrcp.f32 %v216_v15 }
 0x21d   :  { %v280_v17 = vpop.eup %279 }
 0x21e   :  { %vm219_vm2 = vcmp.ge.f32.partialorder %v280_v17, 0.7 }
 0x21f   :  { %v222_v19 = vsel %vm219_vm2, %v206_v8, %v171_v18 }
 0x220   :  { %223 = vst.msk [vmem:[#allocation7] sm:$0x3] %vm207_vm1, %v222_v19 }
 0x221   :  { %346 = shalt.err (!%p343_p9)
}
 0x222   :  { %s347_s3 = scalar_lea.hbm %s502_s6, 32 }
 0x223   :  { %p348_p10 = scmp.ne.s32.totalorder %s502_s6, %s347_s3  ;;  %p351_p11 = scmp.lt.u32.totalorder %s347_s3, %s502_s6 }
 0x225   :  { %p353_p12 = pnand %p351_p11, %p348_p10 }
 0x227   :  { %356 = shalt.err (!%p353_p12)
}
 0x228   :  { %233 = dma.vmem_to_hbm [thread:$0]  %s231_s28, 32, %s502_s6, [#allocation4]  }
 0x229   :  { %361 = dma.done.wait [#allocation4], 32  }
 0x22a   :  { %362 = vsyncadd [#allocation4], 4294967264 }
 0x22b   :  { %363 = dma.done.wait [#allocation9], 64  }
 0x22c   :  { %364 = vsyncadd [#allocation9], 4294967232 }
 0x22d   :  { %250 = vsyncpa [#allocation3], 1 }
 0x22e   :  { %251 = vsyncpa [#allocation4], 1 }
 0x22f   :  { %252 = vsyncpa [#allocation9], 1 }
 0x230   :  { %253 = vsyncpa [#allocation5], 1 }

</bundles_post_ra>
